<compile_context>
chip_gen: v7x
topology: tpu7x:2x2x1
jax: 0.10.0
libtpu: 0.0.40
codegen_flags: <defaults>
</compile_context>

<pallas_src>
import jax
import jax.numpy as jnp
from jax import lax
from jax.experimental import pallas as pl
from jax.experimental.pallas import tpu as pltpu

_LANES = 128


def _default_num_shards():
    """1 on single-TensorCore chips (v5e/v6e), 2 on dual-TC v7x."""
    try:
        kind = jax.devices()[0].device_kind.lower()
    except Exception:  # defensive: never let detection break the kernel
        return 1
    return 2 if "v7" in kind else 1


def _make_sum_kernel(tile, acc_rows, ncols, tiles_per_shard, rows, needs_mask):
    """Kernel that accumulates per-shard partial sums of x into o_ref.

    Grid: (shard, row_tile). The output block index is constant along the
    inner ("arbitrary") axis, so o_ref stays VMEM-resident across the whole
    reduction (no scratch accumulator, no final copy).
    """
    groups = tile // acc_rows

    def kernel(x_ref, o_ref):
        k = pl.program_id(1)

        @pl.when(k == 0)
        def _():
            o_ref[...] = jnp.zeros_like(o_ref)

        # Cast the streamed dtype (bf16/f16/f32/int8) to f32 on the VPU.
        x = x_ref[...].astype(jnp.float32)

        if needs_mask:  # compiled in only when rows overhang the tile grid
            p = pl.program_id(0)
            t = p * tiles_per_shard + k
            rem = rows - t * tile  # valid rows left in this tile (may be <= 0)
            row_idx = lax.broadcasted_iota(jnp.int32, (tile, ncols), 0)
            x = jnp.where(row_idx < rem, x, 0.0)

        if groups == 1:
            o_ref[...] += x
        else:
            # acc_rows independent accumulation chains; VPU adds only. The
            # cross-lane reduce + divide happen once in the wrapper epilogue.
            o_ref[...] += x.reshape(groups, acc_rows, ncols).sum(axis=0)

    return kernel


def toy_model_forward(x, *, block_bytes=1 << 20, num_shards=None):
    """Equivalent of ToyModel.forward: torch.mean(input - 0.9).unsqueeze(0)."""
    n = int(x.size)
    if n == 0:
        return jnp.full((1,), jnp.nan, dtype=jnp.float32)

    if num_shards is None:
        num_shards = _default_num_shards()

    itemsize = jnp.dtype(x.dtype).itemsize

    # Free (contiguous) 2-D reshape only: lane-dense 128 columns when the size
    # allows, otherwise keep the original trailing dim. No pad, no slice ->
    # the kernel is the single streaming HBM pass over the data.
    if n % _LANES == 0:
        ncols = _LANES
    else:
        ncols = int(x.shape[-1])
    rows = n // ncols
    x2d = x.reshape(rows, ncols)

    # ~1 MiB input block regardless of dtype (VMEM pads lanes to 128).
    lane_padded = -(-ncols // _LANES) * _LANES
    target_rows = max(8, (block_bytes // (lane_padded * itemsize)) // 8 * 8)
    tile = rows if rows <= target_rows else target_rows  # tile==rows is legal
    tiles_total = -(-rows // tile)

    if tiles_total < num_shards:
        num_shards = 1

    # Several independent accumulator rows (break the serial vadd chain).
    acc_rows = tile
    for cand in (32, 16, 8):
        if tile % cand == 0:
            acc_rows = cand
            break
    if num_shards > 1 and acc_rows % 8 != 0:
        num_shards = 1

    tiles_per_shard = -(-tiles_total // num_shards)
    needs_mask = tiles_per_shard * num_shards * tile != rows

    kernel = _make_sum_kernel(tile, acc_rows, ncols, tiles_per_shard, rows,
                              needs_mask)

    partial = pl.pallas_call(
        kernel,
        out_shape=jax.ShapeDtypeStruct((num_shards * acc_rows, ncols),
                                       jnp.float32),
        grid_spec=pltpu.PrefetchScalarGridSpec(
            num_scalar_prefetch=0,
            grid=(num_shards, tiles_per_shard),
            in_specs=[
                pl.BlockSpec(
                    (tile, ncols),
                    lambda p, k, _t=tiles_per_shard: (p * _t + k, 0),
                )
            ],
            out_specs=pl.BlockSpec((acc_rows, ncols), lambda p, k: (p, 0)),
        ),
        # TODO(synk): on v7x, verify via xprof that "parallel" lands on both
        # TensorCores; if not, switch the leading axis to pltpu.CORE_PARALLEL.
        compiler_params=pltpu.CompilerParams(
            dimension_semantics=("parallel", "arbitrary"),
        ),
    )(x2d)

    # Tiny epilogue: combine partials, apply the hoisted -0.9 with the TRUE
    # element count (zero-masked contributions are bias-free), divide,
    # unsqueeze(0).
    total = jnp.sum(partial)
    mean = (total - jnp.float32(0.9) * n) / n
    return mean.reshape(1).astype(jnp.float32)


if __name__ == "__main__":
    key = jax.random.PRNGKey(0)
    # Small NCHW input consistent with a generic image-like tensor.
    x = jax.random.normal(key, (2, 4, 16, 16), dtype=jnp.float32)

    fwd = jax.jit(toy_model_forward)  # fuse reshape + kernel + epilogue
    result = fwd(x)
    jax.block_until_ready(result)

    # sanity check against plain-JAX reference
    ref = jnp.mean(x - 0.9).reshape(1)
    assert result.shape == (1,)
    assert jnp.allclose(result, ref, atol=1e-5, rtol=1e-5), (result, ref)

    print("KERNEL_OK")
</pallas_src>

<mosaic_0001>
module attributes {stable_mosaic.version = 11 : i64} {
  func.func @kernel(%arg0: i32, %arg1: i32, %arg2: memref<16x128xf32, #tpu.memory_space<vmem>>, %arg3: memref<16x128xf32, #tpu.memory_space<vmem>>) attributes {dimension_semantics = [#tpu.dimension_semantics<parallel>, #tpu.dimension_semantics<arbitrary>], iteration_bounds = array<i64: 1, 1>, scalar_prefetch = 0 : i64, scratch_operands = 0 : i64, tpu.core_type = #tpu.core_type<tc>, window_params = [{transform_indices = @transform_0, window_bounds = array<i64: 16, 128>}, {transform_indices = @transform_1, window_bounds = array<i64: 16, 128>}]} {
    %c0_i32 = arith.constant 0 : i32
    %0 = arith.cmpi eq, %arg1, %c0_i32 : i32
    %1 = arith.extui %0 : i1 to i32
    %c0_i32_0 = arith.constant 0 : i32
    %2 = arith.cmpi ne, %1, %c0_i32_0 : i32
    scf.if %2 {
      %cst = arith.constant 0.000000e+00 : f32
      %7 = vector.broadcast %cst : f32 to vector<16x128xf32>
      %c0_6 = arith.constant 0 : index
      %c0_7 = arith.constant 0 : index
      %8 = vector.load %arg3[%c0_6, %c0_7] : memref<16x128xf32, #tpu.memory_space<vmem>>, vector<16x128xf32>
      tpu.vector_store %arg3[%c0_6, %c0_7], %7 {strides = array<i32>} : memref<16x128xf32, #tpu.memory_space<vmem>>, vector<16x128xf32>,
    } else {
    }
    %c0 = arith.constant 0 : index
    %c0_1 = arith.constant 0 : index
    %3 = vector.load %arg2[%c0, %c0_1] : memref<16x128xf32, #tpu.memory_space<vmem>>, vector<16x128xf32>
    %c0_2 = arith.constant 0 : index
    %c0_3 = arith.constant 0 : index
    %4 = vector.load %arg3[%c0_2, %c0_3] : memref<16x128xf32, #tpu.memory_space<vmem>>, vector<16x128xf32>
    %5 = arith.addf %4, %3 : vector<16x128xf32>
    %c0_4 = arith.constant 0 : index
    %c0_5 = arith.constant 0 : index
    %6 = vector.load %arg3[%c0_4, %c0_5] : memref<16x128xf32, #tpu.memory_space<vmem>>, vector<16x128xf32>
    tpu.vector_store %arg3[%c0_4, %c0_5], %5 {strides = array<i32>} : memref<16x128xf32, #tpu.memory_space<vmem>>, vector<16x128xf32>,
    return
  }
  func.func @transform_0(%arg0: i32, %arg1: i32) -> (i32, i32) {
    %c1_i32 = arith.constant 1 : i32
    %0 = arith.muli %arg0, %c1_i32 : i32
    %1 = arith.addi %0, %arg1 : i32
    %c0_i32 = arith.constant 0 : i32
    %c0_i32_0 = arith.constant 0 : i32
    return %1, %c0_i32 : i32, i32
  }
  func.func @transform_1(%arg0: i32, %arg1: i32) -> (i32, i32) {
    %c0_i32 = arith.constant 0 : i32
    %c0_i32_0 = arith.constant 0 : i32
    return %arg0, %c0_i32 : i32, i32
  }
}

</mosaic_0001>

<bundles_post_ra>
// kernel: toy_model_forward.1
= control target key start
LH: loop header
LB: loop body
LE: loop exit
PB: predicated region body
PF: predicated region fallthrough
CT: control target
= control target key end

     0   :  { %s77_s0 = inlined_call_operand.vmem [shape: f32[16,128], index: 0, kind: input, shape index: {}]   ;;  %s78_s1 = inlined_call_operand.vmem [shape: f32[16,128], index: 1, kind: output, shape index: {}]  }
   0x1   :  { %v36_v0 = vld [vmem:[%s77_s0] sm:$0xff]  ;;  %v37_v1 = vld [vmem:[%s77_s0 + $0x8] sm:$0xff] }
   0x2   :  { %42 = vst [vmem:[%s78_s1] sm:$0xff] %v36_v0  ;;  %43 = vst [vmem:[%s78_s1 + $0x8] sm:$0xff] %v37_v1 }

</bundles_post_ra>
